<compile_context>
chip_gen: v7x
topology: tpu7x:2x2x1
jax: 0.10.0
libtpu: 0.0.40
codegen_flags: <defaults>
</compile_context>

<pallas_src>
import functools

import numpy as np
import jax
import jax.numpy as jnp
from jax import lax
from jax.experimental import pallas as pl
from jax.experimental.pallas import tpu as pltpu


_NEG_FILL = -1e30  # finite mask fill (torch uses finfo.min; finite avoids inf*0 on VPU)


def _round_up(x, m):
    return ((x + m - 1) // m) * m


def _policy_kernel(x_ref, h0_ref, c0_ref,
                   wcat_ref, bg_ref, whead_ref, bhead_ref,
                   mask_ref, gumbel_ref,
                   policy_ref, scalars_ref, h_ref, c_ref,
                   *, action_dim):
    t = pl.program_id(0)
    H = h0_ref.shape[1]

    # Step 0: seed the VMEM-resident recurrent state from the initial state inputs.
    @pl.when(t == 0)
    def _():
        h_ref[...] = h0_ref[...]
        c_ref[...] = c0_ref[...]

    x = x_ref[0]                      # (B, Fp) f32, zero-padded features
    h_prev = h_ref[...]               # (B, H)  f32, carried in VMEM across grid steps
    c_prev = c_ref[...]

    # ---- LSTMCell: single merged K = Fp + H MXU push (bf16 in, f32 accumulate) ----
    xh = jnp.concatenate([x, h_prev], axis=1).astype(jnp.bfloat16)       # (B, Fp+H)
    gates = (jnp.dot(xh, wcat_ref[...], preferred_element_type=jnp.float32)
             + bg_ref[...])                                              # (B, 4H) [i|f|o|g]
    sig = jax.nn.sigmoid(gates[:, :3 * H])        # one EUP pass covers i, f, o
    i_g = sig[:, 0 * H:1 * H]
    f_g = sig[:, 1 * H:2 * H]
    o_g = sig[:, 2 * H:3 * H]
    g_g = jnp.tanh(gates[:, 3 * H:4 * H])
    c = f_g * c_prev + i_g * g_g
    h = o_g * jnp.tanh(c)
    h_ref[...] = h
    c_ref[...] = c

    # ---- Merged action + value head: one lane-dense (H, 128) MXU push ----
    head = (jnp.dot(h.astype(jnp.bfloat16), whead_ref[...],
                    preferred_element_type=jnp.float32)
            + bhead_ref[...])                                            # (B, HP)

    mask = mask_ref[0] > 0            # (B, HP); padded lanes (>= action_dim) are False
    logits = jnp.where(mask, head, jnp.float32(_NEG_FILL))
    m = jnp.max(logits, axis=1, keepdims=True)
    lse = m + jnp.log(jnp.sum(jnp.exp(logits - m), axis=1, keepdims=True))
    logits_n = logits - lse           # normalized log-probs (padded lanes ~ -1e30)
    probs = jnp.exp(logits_n)         # padded lanes exactly 0
    policy_ref[0] = probs

    # Gumbel-max sampling (min-index tie break), all on the 128-lane layout.
    B, L = logits.shape
    lane = lax.broadcasted_iota(jnp.int32, (B, L), 1).astype(jnp.float32)
    z = logits + gumbel_ref[0]
    zmax = jnp.max(z, axis=1, keepdims=True)
    action_f = jnp.min(jnp.where(z == zmax, lane, jnp.float32(L)),
                       axis=1, keepdims=True)                            # (B, 1)
    sel = lane == action_f
    logp = jnp.sum(jnp.where(sel, logits_n, 0.0), axis=1, keepdims=True)
    ent = -jnp.sum(jnp.where(mask, logits_n * probs, 0.0), axis=1, keepdims=True)
    value = jnp.sum(jnp.where(lane == jnp.float32(action_dim), head, 0.0),
                    axis=1, keepdims=True)    # value head lives in lane `action_dim`

    # Lane-dense packed scalar slab: [action, log_prob, entropy, value, 0, ...]
    scalars_ref[0] = (jnp.where(lane == 0.0, action_f, 0.0)
                      + jnp.where(lane == 1.0, logp, 0.0)
                      + jnp.where(lane == 2.0, ent, 0.0)
                      + jnp.where(lane == 3.0, value, 0.0))


def pack_params(base, feature_dim, action_dim, hidden_dim):
    """Merge / permute / pad torch-layout params into the kernel layout."""
    F, A, H = feature_dim, action_dim, hidden_dim
    Fp = max(128, _round_up(F, 128))
    HP = max(128, _round_up(A + 1, 128))

    def permute_gates(w):  # torch gate blocks [i|f|g|o] -> kernel order [i|f|o|g]
        return jnp.concatenate([w[0:H], w[H:2 * H], w[3 * H:4 * H], w[2 * H:3 * H]],
                               axis=0)

    w_ih_p = permute_gates(base["w_ih"]).T        # (F, 4H)
    w_hh_p = permute_gates(base["w_hh"]).T        # (H, 4H)
    w_cat = jnp.zeros((Fp + H, 4 * H), jnp.float32)
    w_cat = w_cat.at[:F].set(w_ih_p)
    w_cat = w_cat.at[Fp:Fp + H].set(w_hh_p)
    b_gates = (permute_gates(base["b_ih"]) + permute_gates(base["b_hh"]))[None, :]

    w_head = jnp.zeros((H, HP), jnp.float32)
    w_head = w_head.at[:, :A].set(base["w_a"].T)
    w_head = w_head.at[:, A].set(base["w_v"][0])
    b_head = jnp.zeros((1, HP), jnp.float32)
    b_head = b_head.at[0, :A].set(base["b_a"])
    b_head = b_head.at[0, A].set(base["b_v"][0])

    return {
        "w_cat": w_cat.astype(jnp.bfloat16),      # bf16 MXU inputs (f32 accumulation)
        "b_gates": b_gates.astype(jnp.float32),
        "w_head": w_head.astype(jnp.bfloat16),
        "b_head": b_head.astype(jnp.float32),
        "action_dim": A,
        "hidden_dim": H,
        "feature_dim": F,
    }


def init_params(key, feature_dim, action_dim, hidden_dim=128):
    """Deterministic init mirroring PyTorch default uniform ranges (torch layouts)."""
    ks = jax.random.split(key, 8)
    k = 1.0 / np.sqrt(hidden_dim)
    u = lambda kk, shape: jax.random.uniform(kk, shape, jnp.float32, -k, k)
    base = {
        "w_ih": u(ks[0], (4 * hidden_dim, feature_dim)),
        "w_hh": u(ks[1], (4 * hidden_dim, hidden_dim)),
        "b_ih": u(ks[2], (4 * hidden_dim,)),
        "b_hh": u(ks[3], (4 * hidden_dim,)),
        "w_a": u(ks[4], (action_dim, hidden_dim)),
        "b_a": u(ks[5], (action_dim,)),
        "w_v": u(ks[6], (1, hidden_dim)),
        "b_v": u(ks[7], (1,)),
    }
    return base, pack_params(base, feature_dim, action_dim, hidden_dim)


def lstm_policy_rollout(features_seq, params, states_lstm, mask_seq, gumbel_seq):
    """Fused multi-step forward.

    features_seq: (T, B, F) f32, mask_seq: (T, B, A) bool, gumbel_seq: (T, B, A) f32.
    Returns (action (T,B), policy (T,B,A), log_prob (T,B), entropy (T,B),
             value (T,B,1), (h (B,H), c (B,H))).
    """
    T, B, F = features_seq.shape
    H = params["hidden_dim"]
    A = params["action_dim"]
    Fp = params["w_cat"].shape[0] - H
    HP = params["w_head"].shape[1]

    if states_lstm is None:
        h0 = jnp.zeros((B, H), jnp.float32)
        c0 = jnp.zeros((B, H), jnp.float32)
    else:
        h0, c0 = states_lstm
        h0 = h0.astype(jnp.float32)
        c0 = c0.astype(jnp.float32)

    x_pad = jnp.pad(features_seq.astype(jnp.float32), ((0, 0), (0, 0), (0, Fp - F)))
    mask_pad = jnp.pad(mask_seq.astype(jnp.int32), ((0, 0), (0, 0), (0, HP - A)))
    gum_pad = jnp.pad(gumbel_seq.astype(jnp.float32), ((0, 0), (0, 0), (0, HP - A)))

    kernel = functools.partial(_policy_kernel, action_dim=A)

    out_shape = (
        jax.ShapeDtypeStruct((T, B, HP), jnp.float32),   # padded probs
        jax.ShapeDtypeStruct((T, B, HP), jnp.float32),   # packed scalars
        jax.ShapeDtypeStruct((B, H), jnp.float32),       # final hidden
        jax.ShapeDtypeStruct((B, H), jnp.float32),       # final cell
    )
    in_specs = [
        pl.BlockSpec((1, B, Fp), lambda t: (t, 0, 0)),         # per-step features
        pl.BlockSpec((B, H), lambda t: (0, 0)),                # h0 (read at t==0)
        pl.BlockSpec((B, H), lambda t: (0, 0)),                # c0 (read at t==0)
        pl.BlockSpec((Fp + H, 4 * H), lambda t: (0, 0)),       # merged gate weights
        pl.BlockSpec((1, 4 * H), lambda t: (0, 0)),            # merged gate bias
        pl.BlockSpec((H, HP), lambda t: (0, 0)),               # merged head weights
        pl.BlockSpec((1, HP), lambda t: (0, 0)),               # merged head bias
        pl.BlockSpec((1, B, HP), lambda t: (t, 0, 0)),         # per-step mask
        pl.BlockSpec((1, B, HP), lambda t: (t, 0, 0)),         # per-step gumbel noise
    ]
    out_specs = (
        pl.BlockSpec((1, B, HP), lambda t: (t, 0, 0)),
        pl.BlockSpec((1, B, HP), lambda t: (t, 0, 0)),
        pl.BlockSpec((B, H), lambda t: (0, 0)),                # VMEM-resident carry
        pl.BlockSpec((B, H), lambda t: (0, 0)),                # VMEM-resident carry
    )

    probs_pad, scalars, h_out, c_out = pl.pallas_call(
        kernel,
        grid=(T,),
        in_specs=in_specs,
        out_specs=out_specs,
        out_shape=out_shape,
        input_output_aliases={1: 2, 2: 3},                     # h0->h_out, c0->c_out
        compiler_params=pltpu.CompilerParams(
            dimension_semantics=("arbitrary",)),               # sequential recurrence
    )(x_pad, h0, c0,
      params["w_cat"], params["b_gates"], params["w_head"], params["b_head"],
      mask_pad, gum_pad)

    policy = probs_pad[..., :A]
    action = scalars[..., 0].astype(jnp.int32)
    log_prob = scalars[..., 1]
    entropy = scalars[..., 2]
    value = scalars[..., 3:4]
    return action, policy, log_prob, entropy, value, (h_out, c_out)


def shared_lstm_actor_critic(obs, params, states_lstm=None, mask=None, gumbel=None):
    """Single-step forward matching the PyTorch module: obs is (B, C, H, W)."""
    B = obs.shape[0]
    features = obs.reshape(B, -1).astype(jnp.float32)          # FlattenExtractor
    A = params["action_dim"]
    if mask is None:
        mask = jnp.ones((B, A), bool)
    # Sampling noise is supplied by the caller (Gumbel-max) for determinism.
    action, policy, log_prob, entropy, value, (h, c) = lstm_policy_rollout(
        features[None], params, states_lstm, mask[None], gumbel[None])
    return (action[0], policy[0], log_prob[0], entropy[0], value[0], (h, c))


# ---------------------------------------------------------------------------
# Pure-JAX reference (torch-layout weights, same bf16-in / f32-accumulate math).
# ---------------------------------------------------------------------------
def _reference_step(base, x, h0, c0, mask, gumbel):
    H = base["w_hh"].shape[1]
    bf, f32 = jnp.bfloat16, jnp.float32
    gates = (jnp.dot(x.astype(bf), base["w_ih"].T.astype(bf), preferred_element_type=f32)
             + jnp.dot(h0.astype(bf), base["w_hh"].T.astype(bf), preferred_element_type=f32)
             + base["b_ih"] + base["b_hh"])
    i_g = jax.nn.sigmoid(gates[:, 0:H])
    f_g = jax.nn.sigmoid(gates[:, H:2 * H])
    g_g = jnp.tanh(gates[:, 2 * H:3 * H])
    o_g = jax.nn.sigmoid(gates[:, 3 * H:4 * H])
    c = f_g * c0 + i_g * g_g
    h = o_g * jnp.tanh(c)
    logits = (jnp.dot(h.astype(bf), base["w_a"].T.astype(bf), preferred_element_type=f32)
              + base["b_a"])
    logits = jnp.where(mask, logits, jnp.float32(_NEG_FILL))
    m = jnp.max(logits, axis=-1, keepdims=True)
    lse = m + jnp.log(jnp.sum(jnp.exp(logits - m), axis=-1, keepdims=True))
    logits_n = logits - lse
    probs = jnp.exp(logits_n)
    z = logits + gumbel
    entropy = -jnp.sum(jnp.where(mask, logits_n * probs, 0.0), axis=-1)
    value = (jnp.dot(h.astype(bf), base["w_v"].T.astype(bf), preferred_element_type=f32)
             + base["b_v"])
    return dict(logits_n=logits_n, probs=probs, z=z, entropy=entropy,
                value=value, h=h, c=c)


def _check_step(outs, ref, action_dim, tol):
    action, policy, log_prob, entropy, value = outs
    act = np.asarray(action).astype(np.int64)[:, None]
    assert np.all((act >= 0) & (act < action_dim))
    z = np.asarray(ref["z"])
    # Kernel action must be an argmax of the (reference) perturbed logits.
    assert np.all(np.take_along_axis(z, act, axis=1) >= z.max(axis=1, keepdims=True) - 1e-3)
    ref_lp = np.take_along_axis(np.asarray(ref["logits_n"]), act, axis=1)[:, 0]
    assert np.allclose(np.asarray(log_prob), ref_lp, **tol)
    assert np.allclose(np.asarray(policy), np.asarray(ref["probs"]), **tol)
    assert np.allclose(np.asarray(entropy), np.asarray(ref["entropy"]), **tol)
    assert np.allclose(np.asarray(value), np.asarray(ref["value"]), **tol)


if __name__ == "__main__":
    key = jax.random.PRNGKey(0)
    k_obs, k_par, k_mask, k_gum, k_obs2, k_mask2, k_gum2 = jax.random.split(key, 7)

    B, C, Hi, Wi = 8, 4, 4, 4
    F = C * Hi * Wi          # 64 features after flatten
    H = 128                  # lstm_hidden_dim default of the module
    A = 16                   # action_dim
    tol = dict(atol=1e-3, rtol=1e-3)

    base, params = init_params(k_par, F, A, H)

    # ---- single-step forward (mirrors the PyTorch module's forward) ----
    obs = jax.random.normal(k_obs, (B, C, Hi, Wi), jnp.float32)
    mask = jax.random.uniform(k_mask, (B, A)) > 0.3
    mask = mask.at[:, 0].set(True)                       # >= 1 valid action per row
    u = jax.random.uniform(k_gum, (B, A), jnp.float32, 1e-6, 1.0 - 1e-6)
    gumbel = -jnp.log(-jnp.log(u))

    out = shared_lstm_actor_critic(obs, params, None, mask, gumbel)
    out = jax.block_until_ready(out)
    action, policy, log_prob, entropy, value, (hidden, cell) = out

    h0 = jnp.zeros((B, H), jnp.float32)
    c0 = jnp.zeros((B, H), jnp.float32)
    ref = _reference_step(base, obs.reshape(B, -1), h0, c0, mask, gumbel)
    _check_step((action, policy, log_prob, entropy, value), ref, A, tol)
    assert np.allclose(np.asarray(hidden), np.asarray(ref["h"]), **tol)
    assert np.allclose(np.asarray(cell), np.asarray(ref["c"]), **tol)

    # ---- fused multi-step rollout: time loop fused into one pallas_call ----
    T = 5
    obs_seq = jax.random.normal(k_obs2, (T, B, C, Hi, Wi), jnp.float32)
    mask_seq = jax.random.uniform(k_mask2, (T, B, A)) > 0.3
    mask_seq = mask_seq.at[:, :, 0].set(True)
    u2 = jax.random.uniform(k_gum2, (T, B, A), jnp.float32, 1e-6, 1.0 - 1e-6)
    gum_seq = -jnp.log(-jnp.log(u2))
    feat_seq = obs_seq.reshape(T, B, -1)

    rout = lstm_policy_rollout(feat_seq, params, None, mask_seq, gum_seq)
    rout = jax.block_until_ready(rout)
    a_seq, p_seq, lp_seq, ent_seq, v_seq, (h_fin, c_fin) = rout

    hh, cc = h0, c0
    for t in range(T):
        ref = _reference_step(base, feat_seq[t], hh, cc, mask_seq[t], gum_seq[t])
        hh, cc = ref["h"], ref["c"]
        _check_step((a_seq[t], p_seq[t], lp_seq[t], ent_seq[t], v_seq[t]), ref, A, tol)
    assert np.allclose(np.asarray(h_fin), np.asarray(hh), **tol)
    assert np.allclose(np.asarray(c_fin), np.asarray(cc), **tol)

    print("KERNEL_OK")
</pallas_src>

<mosaic_0001>
module attributes {stable_mosaic.version = 11 : i64} {
  func.func @_policy_kernel(%arg0: i32, %arg1: memref<1x8x128xf32, #tpu.memory_space<vmem>>, %arg2: memref<8x128xf32, #tpu.memory_space<vmem>>, %arg3: memref<8x128xf32, #tpu.memory_space<vmem>>, %arg4: memref<256x512xbf16, #tpu.memory_space<vmem>>, %arg5: memref<1x512xf32, #tpu.memory_space<vmem>>, %arg6: memref<128x128xbf16, #tpu.memory_space<vmem>>, %arg7: memref<1x128xf32, #tpu.memory_space<vmem>>, %arg8: memref<1x8x128xi32, #tpu.memory_space<vmem>>, %arg9: memref<1x8x128xf32, #tpu.memory_space<vmem>>, %arg10: memref<1x8x128xf32, #tpu.memory_space<vmem>>, %arg11: memref<1x8x128xf32, #tpu.memory_space<vmem>>, %arg12: memref<8x128xf32, #tpu.memory_space<vmem>>, %arg13: memref<8x128xf32, #tpu.memory_space<vmem>>) attributes {dimension_semantics = [#tpu.dimension_semantics<arbitrary>], iteration_bounds = array<i64: 1>, scalar_prefetch = 0 : i64, scratch_operands = 0 : i64, tpu.core_type = #tpu.core_type<tc>, window_params = [{transform_indices = @transform_0, window_bounds = array<i64: 1, 8, 128>}, {pipeline_mode = #tpu.pipeline_mode<synchronous>, transform_indices = @transform_1, window_bounds = array<i64: 8, 128>}, {pipeline_mode = #tpu.pipeline_mode<synchronous>, transform_indices = @transform_2, window_bounds = array<i64: 8, 128>}, {pipeline_mode = #tpu.pipeline_mode<synchronous>, transform_indices = @transform_3, window_bounds = array<i64: 256, 512>}, {pipeline_mode = #tpu.pipeline_mode<synchronous>, transform_indices = @transform_4, window_bounds = array<i64: 1, 512>}, {pipeline_mode = #tpu.pipeline_mode<synchronous>, transform_indices = @transform_5, window_bounds = array<i64: 128, 128>}, {pipeline_mode = #tpu.pipeline_mode<synchronous>, transform_indices = @transform_6, window_bounds = array<i64: 1, 128>}, {transform_indices = @transform_7, window_bounds = array<i64: 1, 8, 128>}, {transform_indices = @transform_8, window_bounds = array<i64: 1, 8, 128>}, {transform_indices = @transform_9, window_bounds = array<i64: 1, 8, 128>}, {transform_indices = @transform_10, window_bounds = array<i64: 1, 8, 128>}, {pipeline_mode = #tpu.pipeline_mode<synchronous>, transform_indices = @transform_11, window_bounds = array<i64: 8, 128>}, {pipeline_mode = #tpu.pipeline_mode<synchronous>, transform_indices = @transform_12, window_bounds = array<i64: 8, 128>}]} {
    %c0_i32 = arith.constant 0 : i32
    %0 = arith.cmpi eq, %arg0, %c0_i32 : i32
    %1 = arith.extui %0 : i1 to i32
    %c0_i32_0 = arith.constant 0 : i32
    %2 = arith.cmpi ne, %1, %c0_i32_0 : i32
    scf.if %2 {
      %c0_56 = arith.constant 0 : index
      %c0_57 = arith.constant 0 : index
      %121 = vector.load %arg2[%c0_56, %c0_57] : memref<8x128xf32, #tpu.memory_space<vmem>>, vector<8x128xf32>
      %c0_58 = arith.constant 0 : index
      %c0_59 = arith.constant 0 : index
      %122 = vector.load %arg12[%c0_58, %c0_59] : memref<8x128xf32, #tpu.memory_space<vmem>>, vector<8x128xf32>
      tpu.vector_store %arg12[%c0_58, %c0_59], %121 {strides = array<i32>} : memref<8x128xf32, #tpu.memory_space<vmem>>, vector<8x128xf32>,
      %c0_60 = arith.constant 0 : index
      %c0_61 = arith.constant 0 : index
      %123 = vector.load %arg3[%c0_60, %c0_61] : memref<8x128xf32, #tpu.memory_space<vmem>>, vector<8x128xf32>
      %c0_62 = arith.constant 0 : index
      %c0_63 = arith.constant 0 : index
      %124 = vector.load %arg13[%c0_62, %c0_63] : memref<8x128xf32, #tpu.memory_space<vmem>>, vector<8x128xf32>
      tpu.vector_store %arg13[%c0_62, %c0_63], %123 {strides = array<i32>} : memref<8x128xf32, #tpu.memory_space<vmem>>, vector<8x128xf32>,
    } else {
    }
    %c0 = arith.constant 0 : index
    %c0_1 = arith.constant 0 : index
    %c0_2 = arith.constant 0 : index
    %3 = vector.load %arg1[%c0, %c0_1, %c0_2] : memref<1x8x128xf32, #tpu.memory_space<vmem>>, vector<1x8x128xf32>
    %4 = vector.shape_cast %3 : vector<1x8x128xf32> to vector<8x128xf32>
    %c0_3 = arith.constant 0 : index
    %c0_4 = arith.constant 0 : index
    %5 = vector.load %arg12[%c0_3, %c0_4] : memref<8x128xf32, #tpu.memory_space<vmem>>, vector<8x128xf32>
    %c0_5 = arith.constant 0 : index
    %c0_6 = arith.constant 0 : index
    %6 = vector.load %arg13[%c0_5, %c0_6] : memref<8x128xf32, #tpu.memory_space<vmem>>, vector<8x128xf32>
    %7 = tpu.concatenate %4, %5 in 1 : vector<8x128xf32>, vector<8x128xf32> -> vector<8x256xf32>
    %8 = arith.truncf %7 : vector<8x256xf32> to vector<8x256xbf16>
    %c0_7 = arith.constant 0 : index
    %c0_8 = arith.constant 0 : index
    %9 = vector.load %arg4[%c0_7, %c0_8] : memref<256x512xbf16, #tpu.memory_space<vmem>>, vector<256x512xbf16>
    %cst = arith.constant dense<0.000000e+00> : vector<8x512xf32>
    %10 = tpu.matmul %8, %9, %cst {dimension_numbers = #tpu.dot_dimension_numbers<[1], [0], [0], [1], [0, 0, 1, 1], [], []>} : vector<8x256xbf16>, vector<256x512xbf16>, vector<8x512xf32> -> vector<8x512xf32>
    %c0_9 = arith.constant 0 : index
    %c0_10 = arith.constant 0 : index
    %11 = vector.load %arg5[%c0_9, %c0_10] : memref<1x512xf32, #tpu.memory_space<vmem>>, vector<1x512xf32>
    %12 = vector.broadcast %11 : vector<1x512xf32> to vector<8x512xf32>
    %13 = arith.addf %10, %12 : vector<8x512xf32>
    %14 = vector.extract_strided_slice %13 {offsets = [0, 0], sizes = [8, 384], strides = [1, 1]} : vector<8x512xf32> to vector<8x384xf32>
    %15 = arith.negf %14 : vector<8x384xf32>
    %16 = math.exp %15 : vector<8x384xf32>
    %cst_11 = arith.constant 1.000000e+00 : f32
    %17 = vector.broadcast %cst_11 : f32 to vector<8x384xf32>
    %18 = arith.addf %17, %16 : vector<8x384xf32>
    %19 = arith.divf %17, %18 : vector<8x384xf32>
    %20 = vector.extract_strided_slice %19 {offsets = [0, 0], sizes = [8, 128], strides = [1, 1]} : vector<8x384xf32> to vector<8x128xf32>
    %21 = vector.extract_strided_slice %19 {offsets = [0, 128], sizes = [8, 128], strides = [1, 1]} : vector<8x384xf32> to vector<8x128xf32>
    %22 = vector.extract_strided_slice %19 {offsets = [0, 256], sizes = [8, 128], strides = [1, 1]} : vector<8x384xf32> to vector<8x128xf32>
    %23 = vector.extract_strided_slice %13 {offsets = [0, 384], sizes = [8, 128], strides = [1, 1]} : vector<8x512xf32> to vector<8x128xf32>
    %24 = math.tanh %23 : vector<8x128xf32>
    %25 = arith.mulf %21, %6 : vector<8x128xf32>
    %26 = arith.mulf %20, %24 : vector<8x128xf32>
    %27 = arith.addf %25, %26 : vector<8x128xf32>
    %28 = math.tanh %27 : vector<8x128xf32>
    %29 = arith.mulf %22, %28 : vector<8x128xf32>
    %c0_12 = arith.constant 0 : index
    %c0_13 = arith.constant 0 : index
    %30 = vector.load %arg12[%c0_12, %c0_13] : memref<8x128xf32, #tpu.memory_space<vmem>>, vector<8x128xf32>
    tpu.vector_store %arg12[%c0_12, %c0_13], %29 {strides = array<i32>} : memref<8x128xf32, #tpu.memory_space<vmem>>, vector<8x128xf32>,
    %c0_14 = arith.constant 0 : index
    %c0_15 = arith.constant 0 : index
    %31 = vector.load %arg13[%c0_14, %c0_15] : memref<8x128xf32, #tpu.memory_space<vmem>>, vector<8x128xf32>
    tpu.vector_store %arg13[%c0_14, %c0_15], %27 {strides = array<i32>} : memref<8x128xf32, #tpu.memory_space<vmem>>, vector<8x128xf32>,
    %32 = arith.truncf %29 : vector<8x128xf32> to vector<8x128xbf16>
    %c0_16 = arith.constant 0 : index
    %c0_17 = arith.constant 0 : index
    %33 = vector.load %arg6[%c0_16, %c0_17] : memref<128x128xbf16, #tpu.memory_space<vmem>>, vector<128x128xbf16>
    %cst_18 = arith.constant dense<0.000000e+00> : vector<8x128xf32>
    %34 = tpu.matmul %32, %33, %cst_18 {dimension_numbers = #tpu.dot_dimension_numbers<[1], [0], [0], [1], [0, 0, 1, 1], [], []>} : vector<8x128xbf16>, vector<128x128xbf16>, vector<8x128xf32> -> vector<8x128xf32>
    %c0_19 = arith.constant 0 : index
    %c0_20 = arith.constant 0 : index
    %35 = vector.load %arg7[%c0_19, %c0_20] : memref<1x128xf32, #tpu.memory_space<vmem>>, vector<1x128xf32>
    %36 = vector.broadcast %35 : vector<1x128xf32> to vector<8x128xf32>
    %37 = arith.addf %34, %36 : vector<8x128xf32>
    %c0_21 = arith.constant 0 : index
    %c0_22 = arith.constant 0 : index
    %c0_23 = arith.constant 0 : index
    %38 = vector.load %arg8[%c0_21, %c0_22, %c0_23] : memref<1x8x128xi32, #tpu.memory_space<vmem>>, vector<1x8x128xi32>
    %39 = vector.shape_cast %38 : vector<1x8x128xi32> to vector<8x128xi32>
    %c0_i32_24 = arith.constant 0 : i32
    %40 = vector.broadcast %c0_i32_24 : i32 to vector<8x128xi32>
    %41 = arith.cmpi sgt, %39, %40 : vector<8x128xi32>
    %cst_25 = arith.constant -1.000000e+30 : f32
    %42 = vector.broadcast %cst_25 : f32 to vector<8x128xf32>
    %43 = arith.select %41, %37, %42 : vector<8x128xi1>, vector<8x128xf32>
    %cst_26 = arith.constant dense<0xFF800000> : vector<8xf32>
    %44 = vector.multi_reduction <maximumf>, %43, %cst_26 [1] : vector<8x128xf32> to vector<8xf32>
    %45 = vector.shape_cast %44 : vector<8xf32> to vector<8x1xf32>
    %46 = vector.broadcast %45 : vector<8x1xf32> to vector<8x128xf32>
    %47 = arith.subf %43, %46 : vector<8x128xf32>
    %48 = math.exp %47 : vector<8x128xf32>
    %cst_27 = arith.constant dense<0.000000e+00> : vector<8xf32>
    %49 = vector.multi_reduction <add>, %48, %cst_27 [1] : vector<8x128xf32> to vector<8xf32>
    %50 = vector.shape_cast %49 : vector<8xf32> to vector<8x1xf32>
    %51 = math.log %50 : vector<8x1xf32>
    %52 = arith.addf %45, %51 : vector<8x1xf32>
    %53 = vector.broadcast %52 : vector<8x1xf32> to vector<8x128xf32>
    %54 = arith.subf %43, %53 : vector<8x128xf32>
    %55 = math.exp %54 : vector<8x128xf32>
    %c0_28 = arith.constant 0 : index
    %c0_29 = arith.constant 0 : index
    %c0_30 = arith.constant 0 : index
    %56 = vector.load %arg10[%c0_28, %c0_29, %c0_30] : memref<1x8x128xf32, #tpu.memory_space<vmem>>, vector<1x8x128xf32>
    %57 = vector.shape_cast %56 : vector<1x8x128xf32> to vector<8x128xf32>
    %58 = vector.shape_cast %55 : vector<8x128xf32> to vector<1x8x128xf32>
    tpu.vector_store %arg10[%c0_28, %c0_29, %c0_30], %58 {strides = array<i32>} : memref<1x8x128xf32, #tpu.memory_space<vmem>>, vector<1x8x128xf32>,
    %59 = tpu.iota {dimensions = array<i32: 1>} : vector<8x128xi32>
    %60 = arith.sitofp %59 : vector<8x128xi32> to vector<8x128xf32>
    %c0_31 = arith.constant 0 : index
    %c0_32 = arith.constant 0 : index
    %c0_33 = arith.constant 0 : index
    %61 = vector.load %arg9[%c0_31, %c0_32, %c0_33] : memref<1x8x128xf32, #tpu.memory_space<vmem>>, vector<1x8x128xf32>
    %62 = vector.shape_cast %61 : vector<1x8x128xf32> to vector<8x128xf32>
    %63 = arith.addf %43, %62 : vector<8x128xf32>
    %cst_34 = arith.constant dense<0xFF800000> : vector<8xf32>
    %64 = vector.multi_reduction <maximumf>, %63, %cst_34 [1] : vector<8x128xf32> to vector<8xf32>
    %65 = vector.shape_cast %64 : vector<8xf32> to vector<8x1xf32>
    %66 = vector.broadcast %65 : vector<8x1xf32> to vector<8x128xf32>
    %67 = arith.cmpf oeq, %63, %66 : vector<8x128xf32>
    %cst_35 = arith.constant 1.280000e+02 : f32
    %68 = vector.broadcast %cst_35 : f32 to vector<8x128xf32>
    %69 = arith.select %67, %60, %68 : vector<8x128xi1>, vector<8x128xf32>
    %cst_36 = arith.constant dense<0x7F800000> : vector<8xf32>
    %70 = vector.multi_reduction <minimumf>, %69, %cst_36 [1] : vector<8x128xf32> to vector<8xf32>
    %71 = vector.shape_cast %70 : vector<8xf32> to vector<8x1xf32>
    %72 = vector.broadcast %71 : vector<8x1xf32> to vector<8x128xf32>
    %73 = arith.cmpf oeq, %60, %72 : vector<8x128xf32>
    %cst_37 = arith.constant 0.000000e+00 : f32
    %74 = vector.broadcast %cst_37 : f32 to vector<8x128xf32>
    %75 = arith.select %73, %54, %74 : vector<8x128xi1>, vector<8x128xf32>
    %cst_38 = arith.constant dense<0.000000e+00> : vector<8xf32>
    %76 = vector.multi_reduction <add>, %75, %cst_38 [1] : vector<8x128xf32> to vector<8xf32>
    %77 = vector.shape_cast %76 : vector<8xf32> to vector<8x1xf32>
    %78 = arith.mulf %54, %55 : vector<8x128xf32>
    %cst_39 = arith.constant 0.000000e+00 : f32
    %79 = vector.broadcast %cst_39 : f32 to vector<8x128xf32>
    %80 = arith.select %41, %78, %79 : vector<8x128xi1>, vector<8x128xf32>
    %cst_40 = arith.constant dense<0.000000e+00> : vector<8xf32>
    %81 = vector.multi_reduction <add>, %80, %cst_40 [1] : vector<8x128xf32> to vector<8xf32>
    %82 = vector.shape_cast %81 : vector<8xf32> to vector<8x1xf32>
    %cst_41 = arith.constant 0.000000e+00 : f32
    %83 = vector.broadcast %cst_41 : f32 to vector<8x1xf32>
    %84 = arith.subf %83, %82 : vector<8x1xf32>
    %cst_42 = arith.constant 1.600000e+01 : f32
    %85 = vector.broadcast %cst_42 : f32 to vector<8x128xf32>
    %86 = arith.cmpf oeq, %60, %85 : vector<8x128xf32>
    %cst_43 = arith.constant 0.000000e+00 : f32
    %87 = vector.broadcast %cst_43 : f32 to vector<8x128xf32>
    %88 = arith.select %86, %37, %87 : vector<8x128xi1>, vector<8x128xf32>
    %cst_44 = arith.constant dense<0.000000e+00> : vector<8xf32>
    %89 = vector.multi_reduction <add>, %88, %cst_44 [1] : vector<8x128xf32> to vector<8xf32>
    %90 = vector.shape_cast %89 : vector<8xf32> to vector<8x1xf32>
    %cst_45 = arith.constant 0.000000e+00 : f32
    %91 = vector.broadcast %cst_45 : f32 to vector<8x128xf32>
    %92 = arith.cmpf oeq, %60, %91 : vector<8x128xf32>
    %cst_46 = arith.constant 0.000000e+00 : f32
    %93 = vector.shape_cast %71 : vector<8x1xf32> to vector<8x1xf32>
    %94 = vector.broadcast %93 : vector<8x1xf32> to vector<8x128xf32>
    %95 = vector.broadcast %cst_46 : f32 to vector<8x128xf32>
    %96 = arith.select %92, %94, %95 : vector<8x128xi1>, vector<8x128xf32>
    %cst_47 = arith.constant 1.000000e+00 : f32
    %97 = vector.broadcast %cst_47 : f32 to vector<8x128xf32>
    %98 = arith.cmpf oeq, %60, %97 : vector<8x128xf32>
    %cst_48 = arith.constant 0.000000e+00 : f32
    %99 = vector.shape_cast %77 : vector<8x1xf32> to vector<8x1xf32>
    %100 = vector.broadcast %99 : vector<8x1xf32> to vector<8x128xf32>
    %101 = vector.broadcast %cst_48 : f32 to vector<8x128xf32>
    %102 = arith.select %98, %100, %101 : vector<8x128xi1>, vector<8x128xf32>
    %103 = arith.addf %96, %102 : vector<8x128xf32>
    %cst_49 = arith.constant 2.000000e+00 : f32
    %104 = vector.broadcast %cst_49 : f32 to vector<8x128xf32>
    %105 = arith.cmpf oeq, %60, %104 : vector<8x128xf32>
    %cst_50 = arith.constant 0.000000e+00 : f32
    %106 = vector.shape_cast %84 : vector<8x1xf32> to vector<8x1xf32>
    %107 = vector.broadcast %106 : vector<8x1xf32> to vector<8x128xf32>
    %108 = vector.broadcast %cst_50 : f32 to vector<8x128xf32>
    %109 = arith.select %105, %107, %108 : vector<8x128xi1>, vector<8x128xf32>
    %110 = arith.addf %103, %109 : vector<8x128xf32>
    %cst_51 = arith.constant 3.000000e+00 : f32
    %111 = vector.broadcast %cst_51 : f32 to vector<8x128xf32>
    %112 = arith.cmpf oeq, %60, %111 : vector<8x128xf32>
    %cst_52 = arith.constant 0.000000e+00 : f32
    %113 = vector.shape_cast %90 : vector<8x1xf32> to vector<8x1xf32>
    %114 = vector.broadcast %113 : vector<8x1xf32> to vector<8x128xf32>
    %115 = vector.broadcast %cst_52 : f32 to vector<8x128xf32>
    %116 = arith.select %112, %114, %115 : vector<8x128xi1>, vector<8x128xf32>
    %117 = arith.addf %110, %116 : vector<8x128xf32>
    %c0_53 = arith.constant 0 : index
    %c0_54 = arith.constant 0 : index
    %c0_55 = arith.constant 0 : index
    %118 = vector.load %arg11[%c0_53, %c0_54, %c0_55] : memref<1x8x128xf32, #tpu.memory_space<vmem>>, vector<1x8x128xf32>
    %119 = vector.shape_cast %118 : vector<1x8x128xf32> to vector<8x128xf32>
    %120 = vector.shape_cast %117 : vector<8x128xf32> to vector<1x8x128xf32>
    tpu.vector_store %arg11[%c0_53, %c0_54, %c0_55], %120 {strides = array<i32>} : memref<1x8x128xf32, #tpu.memory_space<vmem>>, vector<1x8x128xf32>,
    return
  }
  func.func @transform_0(%arg0: i32) -> (i32, i32, i32) {
    %c0_i32 = arith.constant 0 : i32
    %c0_i32_0 = arith.constant 0 : i32
    %c0_i32_1 = arith.constant 0 : i32
    return %arg0, %c0_i32, %c0_i32_0 : i32, i32, i32
  }
  func.func @transform_1(%arg0: i32) -> (i32, i32) {
    %c0_i32 = arith.constant 0 : i32
    %c0_i32_0 = arith.constant 0 : i32
    %c0_i32_1 = arith.constant 0 : i32
    return %c0_i32, %c0_i32_0 : i32, i32
  }
  func.func @transform_2(%arg0: i32) -> (i32, i32) {
    %c0_i32 = arith.constant 0 : i32
    %c0_i32_0 = arith.constant 0 : i32
    %c0_i32_1 = arith.constant 0 : i32
    return %c0_i32, %c0_i32_0 : i32, i32
  }
  func.func @transform_3(%arg0: i32) -> (i32, i32) {
    %c0_i32 = arith.constant 0 : i32
    %c0_i32_0 = arith.constant 0 : i32
    %c0_i32_1 = arith.constant 0 : i32
    return %c0_i32, %c0_i32_0 : i32, i32
  }
  func.func @transform_4(%arg0: i32) -> (i32, i32) {
    %c0_i32 = arith.constant 0 : i32
    %c0_i32_0 = arith.constant 0 : i32
    %c0_i32_1 = arith.constant 0 : i32
    return %c0_i32, %c0_i32_0 : i32, i32
  }
  func.func @transform_5(%arg0: i32) -> (i32, i32) {
    %c0_i32 = arith.constant 0 : i32
    %c0_i32_0 = arith.constant 0 : i32
    %c0_i32_1 = arith.constant 0 : i32
    return %c0_i32, %c0_i32_0 : i32, i32
  }
  func.func @transform_6(%arg0: i32) -> (i32, i32) {
    %c0_i32 = arith.constant 0 : i32
    %c0_i32_0 = arith.constant 0 : i32
    %c0_i32_1 = arith.constant 0 : i32
    return %c0_i32, %c0_i32_0 : i32, i32
  }
  func.func @transform_7(%arg0: i32) -> (i32, i32, i32) {
    %c0_i32 = arith.constant 0 : i32
    %c0_i32_0 = arith.constant 0 : i32
    %c0_i32_1 = arith.constant 0 : i32
    return %arg0, %c0_i32, %c0_i32_0 : i32, i32, i32
  }
  func.func @transform_8(%arg0: i32) -> (i32, i32, i32) {
    %c0_i32 = arith.constant 0 : i32
    %c0_i32_0 = arith.constant 0 : i32
    %c0_i32_1 = arith.constant 0 : i32
    return %arg0, %c0_i32, %c0_i32_0 : i32, i32, i32
  }
  func.func @transform_9(%arg0: i32) -> (i32, i32, i32) {
    %c0_i32 = arith.constant 0 : i32
    %c0_i32_0 = arith.constant 0 : i32
    %c0_i32_1 = arith.constant 0 : i32
    return %arg0, %c0_i32, %c0_i32_0 : i32, i32, i32
  }
  func.func @transform_10(%arg0: i32) -> (i32, i32, i32) {
    %c0_i32 = arith.constant 0 : i32
    %c0_i32_0 = arith.constant 0 : i32
    %c0_i32_1 = arith.constant 0 : i32
    return %arg0, %c0_i32, %c0_i32_0 : i32, i32, i32
  }
  func.func @transform_11(%arg0: i32) -> (i32, i32) {
    %c0_i32 = arith.constant 0 : i32
    %c0_i32_0 = arith.constant 0 : i32
    %c0_i32_1 = arith.constant 0 : i32
    return %c0_i32, %c0_i32_0 : i32, i32
  }
  func.func @transform_12(%arg0: i32) -> (i32, i32) {
    %c0_i32 = arith.constant 0 : i32
    %c0_i32_0 = arith.constant 0 : i32
    %c0_i32_1 = arith.constant 0 : i32
    return %c0_i32, %c0_i32_0 : i32, i32
  }
}

</mosaic_0001>

<bundles_post_ra>
// kernel: tpu_custom_call.1
= control target key start
LH: loop header
LB: loop body
LE: loop exit
PB: predicated region body
PF: predicated region fallthrough
CT: control target
= control target key end

     0   :  { %18 = vsyncpa [#allocation3], 0  ;;  %s1477_s0 = inlined_call_operand.vmem [shape: f32[1,8,128], index: 0, kind: input, shape index: {}]   ;;  %s1478_s1 = inlined_call_operand.hbm [shape: f32[8,128], index: 1, kind: input, shape index: {}, may-alias: {1,11}]   ;;  %s1479_s2 = inlined_call_operand.hbm [shape: f32[8,128], index: 2, kind: input, shape index: {}, may-alias: {2,12}]   ;;  %s1480_s3 = inlined_call_operand.hbm [shape: bf16[256,512], index: 3, kind: input, shape index: {}]   ;;  %s1481_s4 = inlined_call_operand.vmem [shape: f32[1,512], index: 4, kind: input, shape index: {}]   ;;  %s1482_s5 = inlined_call_operand.hbm [shape: bf16[128,128], index: 5, kind: input, shape index: {}]   ;;  %s1483_s6 = inlined_call_operand.vmem [shape: f32[1,128], index: 6, kind: input, shape index: {}]   ;;  %s1484_s7 = inlined_call_operand.vmem [shape: s32[1,8,128], index: 7, kind: input, shape index: {}]   ;;  %s1485_s8 = inlined_call_operand.vmem [shape: f32[1,8,128], index: 8, kind: input, shape index: {}]   ;;  %s1486_s9 = inlined_call_operand.hbm [shape: f32[1,8,128], index: 9, kind: output, shape index: {0}]   ;;  %s1487_s10 = inlined_call_operand.hbm [shape: f32[1,8,128], index: 10, kind: output, shape index: {1}]   ;;  %s1488_s11 = inlined_call_operand.hbm [shape: f32[8,128], index: 11, kind: output, shape index: {2}, may-alias: {1,11}]   ;;  %s1489_s12 = inlined_call_operand.hbm [shape: f32[8,128], index: 12, kind: output, shape index: {3}, may-alias: {2,12}]  }
   0x1   :  { %19 = vsyncpa [#allocation6], 0 }
   0x2   :  { %20 = vsyncpa [#allocation9], 0 }
   0x3   :  { %21 = vsyncpa [#allocation4], 0 }
   0x4   :  { %22 = vsyncpa [#allocation12], 0 }
   0x5   :  { %23 = vsyncpa [#allocation15], 0  ;;  %s1274_s21 = smov [#allocation5]   ;;  %s1275_s23 = smov [#allocation2]  }
   0x6   :  { %s42_s22 = sshll.u32 %s1274_s21, 4  ;;  %s32_s24 = sshll.u32 %s1275_s23, 4  ;;  %s43_s22 = int_to_ptr.vmem [resolvable:$true] %s42_s22  ;;  %s33_s24 = int_to_ptr.vmem [resolvable:$true] %s32_s24 }
   0x7   :  { %s1086_s27 = scalar_lea.hbm %s1479_s2, 128 }
   0x8   :  { %p1087_p0 = scmp.ne.s32.totalorder %s1479_s2, %s1086_s27  ;;  %p1090_p1 = scmp.lt.u32.totalorder %s1086_s27, %s1479_s2 }
   0xa   :  { %p1092_p2 = pnand %p1090_p1, %p1087_p0 }
   0xc   :  { %1095 = shalt.err (!%p1092_p2)
}
   0xd   :  { %s1096_s14 = scalar_lea.vmem %s43_s22, 128  ;;  %p1101_p4 = scmp.lt.s32.totalorder %s43_s22, %s43_s22 }
   0xe   :  { %p1097_p3 = scmp.ne.s32.totalorder %s43_s22, %s1096_s14  ;;  %p1102_p5 = scmp.lt.s32.totalorder %s1096_s14, %s1096_s14 }
  0x10   :  { %p1103_p6 = por %p1102_p5, %p1101_p4 }
  0x12   :  { %p1104_p7 = pnand %p1103_p6, %p1097_p3 }
  0x14   :  { %1107 = shalt.err (!%p1104_p7)
}
  0x15   :  { %45 = dma.hbm_to_vmem [thread:$0]  %s1479_s2, 128, %s43_s22, [#allocation6]  }
  0x16   :  { %s1108_s19 = scalar_lea.hbm %s1478_s1, 128 }
  0x17   :  { %p1109_p8 = scmp.ne.s32.totalorder %s1478_s1, %s1108_s19  ;;  %p1112_p9 = scmp.lt.u32.totalorder %s1108_s19, %s1478_s1 }
  0x19   :  { %p1114_p10 = pnand %p1112_p9, %p1109_p8 }
  0x1b   :  { %1117 = shalt.err (!%p1114_p10)
}
  0x1c   :  { %s1118_s26 = scalar_lea.vmem %s33_s24, 128  ;;  %p1123_p12 = scmp.lt.s32.totalorder %s33_s24, %s33_s24 }
  0x1d   :  { %p1119_p11 = scmp.ne.s32.totalorder %s33_s24, %s1118_s26  ;;  %p1124_p13 = scmp.lt.s32.totalorder %s1118_s26, %s1118_s26 }
  0x1f   :  { %p1125_p0 = por %p1124_p13, %p1123_p12 }
  0x21   :  { %p1126_p1 = pnand %p1125_p0, %p1119_p11 }
  0x23   :  { %1129 = shalt.err (!%p1126_p1)
}
  0x24   :  { %35 = dma.hbm_to_vmem [thread:$0]  %s1478_s1, 128, %s33_s24, [#allocation3]  }
  0x25   :  { %s1276_s27 = smov [#allocation7]   ;;  %s1130_s13 = scalar_lea.hbm %s1480_s3, 8192 }
  0x26   :  { %s51_s28 = sshll.u32 %s1276_s27, 4  ;;  %p1131_p2 = scmp.ne.s32.totalorder %s1480_s3, %s1130_s13  ;;  %s52_s28 = int_to_ptr.vmem [resolvable:$true] %s51_s28 }
  0x27   :  { %p1134_p3 = scmp.lt.u32.totalorder %s1130_s13, %s1480_s3 }
  0x29   :  { %p1136_p4 = pnand %p1134_p3, %p1131_p2 }
  0x2b   :  { %1139 = shalt.err (!%p1136_p4)
}
  0x2c   :  { %s1140_s18 = scalar_lea.vmem %s52_s28, 8192  ;;  %p1145_p6 = scmp.lt.s32.totalorder %s52_s28, %s52_s28 }
  0x2d   :  { %p1141_p5 = scmp.ne.s32.totalorder %s52_s28, %s1140_s18  ;;  %p1146_p7 = scmp.lt.s32.totalorder %s1140_s18, %s1140_s18 }
  0x2f   :  { %p1147_p8 = por %p1146_p7, %p1145_p6 }
  0x31   :  { %p1148_p9 = pnand %p1147_p8, %p1141_p5 }
  0x33   :  { %1151 = shalt.err (!%p1148_p9)
}
  0x34   :  { %s1277_s1 = smov 256   ;;  %s1278_s24 = smov 16  }
  0x35   :  { %57 = dma.hbm_to_vmem [thread:$0]  %s1480_s3, 8192, %s52_s28, [#allocation6], %s1277_s1, %s1277_s1, %s1278_s24  }
  0x36   :  { %s1279_s21 = smov [#allocation8]   ;;  %s1152_s2 = scalar_lea.hbm %s1482_s5, 1024 }
  0x37   :  { %s65_s23 = sshll.u32 %s1279_s21, 4  ;;  %p1153_p10 = scmp.ne.s32.totalorder %s1482_s5, %s1152_s2  ;;  %s66_s23 = int_to_ptr.vmem [resolvable:$true] %s65_s23 }
  0x38   :  { %p1156_p11 = scmp.lt.u32.totalorder %s1152_s2, %s1482_s5 }
  0x3a   :  { %p1158_p12 = pnand %p1156_p11, %p1153_p10 }
  0x3c   :  { %1161 = shalt.err (!%p1158_p12)
}
  0x3d   :  { %s1162_s13 = scalar_lea.vmem %s66_s23, 1024  ;;  %p1167_p0 = scmp.lt.s32.totalorder %s66_s23, %s66_s23 }
  0x3e   :  { %p1163_p13 = scmp.ne.s32.totalorder %s66_s23, %s1162_s13  ;;  %p1168_p1 = scmp.lt.s32.totalorder %s1162_s13, %s1162_s13 }
  0x40   :  { %p1169_p2 = por %p1168_p1, %p1167_p0 }
  0x42   :  { %p1170_p3 = pnand %p1169_p2, %p1163_p13 }
  0x44   :  { %1173 = shalt.err (!%p1170_p3)
}
  0x45   :  { %s1280_s3 = smov 64   ;;  %s1281_s28 = smov 4  }
  0x46   :  { %71 = dma.hbm_to_vmem [thread:$0]  %s1482_s5, 1024, %s66_s23, [#allocation9], %s1280_s3, %s1280_s3, %s1281_s28  }
  0x47   :  { %1262 = dma.done.wait [#allocation3], 128  }
  0x48   :  { %1263 = vsyncadd [#allocation3], 4294967168 }
  0x49   :  { %1264 = dma.done.wait [#allocation6], 8320  }
  0x4a   :  { %1265 = vsyncadd [#allocation6], 4294958976 }
  0x4b   :  { %1266 = dma.done.wait [#allocation9], 1024  }
  0x4c   :  { %1267 = vsyncadd [#allocation9], 4294966272  ;;  %v960_v0 = vld [vmem:[#allocation7 + $0x4] ss:$16 sps:$4 sm:$0xff]   ;;  %v962_v1 = vld [vmem:[#allocation7] ss:$16 sps:$4 sm:$0xff]  }
  0x4d   :  { %510 = vmatprep.subr.bf16.mxu0 %v960_v0  ;;  %v963_v2 = vld [vmem:[#allocation7 + $0x24] ss:$16 sps:$4 sm:$0xff]   ;;  %v965_v3 = vld [vmem:[#allocation7 + $0x20] ss:$16 sps:$4 sm:$0xff]   ;;  %v971_v5 = vld [vmem:[#allocation7 + $0xc] ss:$16 sps:$4 sm:$0xff]  }
  0x4e   :  { %511 = vmatpush1.bf16.msra.mxu0 %v962_v1  ;;  %v966_v4 = vld [vmem:[#allocation7 + $0x44] ss:$16 sps:$4 sm:$0xff]   ;;  %v974_v6 = vld [vmem:[#allocation7 + $0x8] ss:$16 sps:$4 sm:$0xff]   ;;  %v968_v7 = vld [vmem:[#allocation7 + $0x40] ss:$16 sps:$4 sm:$0xff]   ;;  %551 = vmatprep.subr.bf16.mxu1 %v971_v5 }
  0x4f   :  { %512 = vmatprep.subr.bf16.mxu0 %v963_v2  ;;  %v969_v8 = vld [vmem:[#allocation7 + $0x64] ss:$16 sps:$4 sm:$0xff]   ;;  %552 = vmatpush1.bf16.msra.mxu1 %v974_v6  ;;  %v977_v9 = vld [vmem:[#allocation7 + $0x2c] ss:$16 sps:$4 sm:$0xff]   ;;  %v980_v10 = vld [vmem:[#allocation7 + $0x28] ss:$16 sps:$4 sm:$0xff]  }
  0x50   :  { %553 = vmatprep.subr.bf16.mxu1 %v977_v9  ;;  %v973_v11 = vld [vmem:[#allocation7 + $0x60] ss:$16 sps:$4 sm:$0xff]   ;;  %v975_v12 = vld [vmem:[#allocation7 + $0x84] ss:$16 sps:$4 sm:$0xff]   ;;  %v983_v13 = vld [vmem:[#allocation7 + $0x4c] ss:$16 sps:$4 sm:$0xff]  }
  0x51   :  { %v986_v14 = vld [vmem:[#allocation7 + $0x48] ss:$16 sps:$4 sm:$0xff]   ;;  %v989_v15 = vld [vmem:[#allocation7 + $0x6c] ss:$16 sps:$4 sm:$0xff]   ;;  %v979_v16 = vld [vmem:[#allocation7 + $0x80] ss:$16 sps:$4 sm:$0xff]  }
  0x52   :  { %513 = vmatpush1.bf16.msra.mxu0 %v965_v3  ;;  %v981_v17 = vld [vmem:[#allocation7 + $0xa4] ss:$16 sps:$4 sm:$0xff]   ;;  %v992_v18 = vld [vmem:[#allocation7 + $0x68] ss:$16 sps:$4 sm:$0xff]   ;;  %v995_v19 = vld [vmem:[#allocation7 + $0x8c] ss:$16 sps:$4 sm:$0xff]  }
  0x53   :  { %514 = vmatprep.subr.bf16.mxu0 %v966_v4  ;;  %554 = vmatpush1.bf16.msra.mxu1 %v980_v10  ;;  %v985_v20 = vld [vmem:[#allocation7 + $0xa0] ss:$16 sps:$4 sm:$0xff]   ;;  %v987_v21 = vld [vmem:[#allocation7 + $0xc4] ss:$16 sps:$4 sm:$0xff]   ;;  %v998_v22 = vld [vmem:[#allocation7 + $0x88] ss:$16 sps:$4 sm:$0xff]  }
  0x54   :  { %555 = vmatprep.subr.bf16.mxu1 %v983_v13  ;;  %v1001_v23 = vld [vmem:[#allocation7 + $0xac] ss:$16 sps:$4 sm:$0xff]   ;;  %v991_v24 = vld [vmem:[#allocation7 + $0xc0] ss:$16 sps:$4 sm:$0xff]   ;;  %v993_v25 = vld [vmem:[#allocation7 + $0xe4] ss:$16 sps:$4 sm:$0xff]   ;;  %v170_v13 = vlaneseq }
  0x55   :  { %v1004_v26 = vld [vmem:[#allocation7 + $0xa8] ss:$16 sps:$4 sm:$0xff]   ;;  %v1007_v27 = vld [vmem:[#allocation7 + $0xcc] ss:$16 sps:$4 sm:$0xff]   ;;  %v997_v28 = vld [vmem:[#allocation7 + $0xe0] ss:$16 sps:$4 sm:$0xff]  }
  0x56   :  { %515 = vmatpush1.bf16.msra.mxu0 %v968_v7  ;;  %v999_v29 = vld [vmem:[#allocation7 + $0x104] ss:$16 sps:$4 sm:$0xff]   ;;  %v1010_v30 = vld [vmem:[#allocation7 + $0xc8] ss:$16 sps:$4 sm:$0xff]   ;;  %v1013_v31 = vld [vmem:[#allocation7 + $0xec] ss:$16 sps:$4 sm:$0xff]  }
  0x57   :  { %516 = vmatprep.subr.bf16.mxu0 %v969_v8  ;;  %556 = vmatpush1.bf16.msra.mxu1 %v986_v14  ;;  %v1003_v32 = vld [vmem:[#allocation7 + $0x100] ss:$16 sps:$4 sm:$0xff]   ;;  %v1005_v33 = vld [vmem:[#allocation7 + $0x124] ss:$16 sps:$4 sm:$0xff]   ;;  %v1016_v34 = vld [vmem:[#allocation7 + $0xe8] ss:$16 sps:$4 sm:$0xff]  }
  0x58   :  { %557 = vmatprep.subr.bf16.mxu1 %v989_v15  ;;  %v1019_v35 = vld [vmem:[#allocation7 + $0x10c] ss:$16 sps:$4 sm:$0xff]   ;;  %v1009_v36 = vld [vmem:[#allocation7 + $0x120] ss:$16 sps:$4 sm:$0xff]   ;;  %v1011_v37 = vld [vmem:[#allocation7 + $0x144] ss:$16 sps:$4 sm:$0xff]  }
  0x59   :  { %v1022_v38 = vld [vmem:[#allocation7 + $0x108] ss:$16 sps:$4 sm:$0xff]   ;;  %v1025_v39 = vld [vmem:[#allocation7 + $0x12c] ss:$16 sps:$4 sm:$0xff]   ;;  %v95_v40 = vld [vmem:[#allocation2] sm:$0xff]  ;;  %v1282_v5 = vmov 0.0  }
  0x5a   :  { %517 = vmatpush1.bf16.msra.mxu0 %v973_v11  ;;  %v1015_v41 = vld [vmem:[#allocation7 + $0x140] ss:$16 sps:$4 sm:$0xff]   ;;  %v103_v42 = vpack.c.bf16 %v95_v40, %v95_v40  ;;  %v1017_v43 = vld [vmem:[#allocation7 + $0x164] ss:$16 sps:$4 sm:$0xff]   ;;  %v1028_v44 = vld [vmem:[#allocation7 + $0x128] ss:$16 sps:$4 sm:$0xff]  }
  0x5b   :  { %518 = vmatprep.subr.bf16.mxu0 %v975_v12  ;;  %558 = vmatpush1.bf16.msra.mxu1 %v992_v18  ;;  %v1021_v45 = vld [vmem:[#allocation7 + $0x160] ss:$16 sps:$4 sm:$0xff]   ;;  %v1031_v46 = vld [vmem:[#allocation7 + $0x14c] ss:$16 sps:$4 sm:$0xff]   ;;  %v1023_v47 = vld [vmem:[#allocation7 + $0x184] ss:$16 sps:$4 sm:$0xff]  }
  0x5c   :  { %559 = vmatprep.subr.bf16.mxu1 %v995_v19  ;;  %542 = vmatprep.mubr.bf16.mxu0 %v103_v42  ;;  %v1034_v48 = vld [vmem:[#allocation7 + $0x148] ss:$16 sps:$4 sm:$0xff]   ;;  %v1037_v49 = vld [vmem:[#allocation7 + $0x16c] ss:$16 sps:$4 sm:$0xff]   ;;  %v1027_v50 = vld [vmem:[#allocation7 + $0x180] ss:$16 sps:$4 sm:$0xff]  }
  0x5d   :  { %583 = vmatprep.mubr.bf16.mxu1 %v103_v42  ;;  %v1029_v51 = vld [vmem:[#allocation7 + $0x1a4] ss:$16 sps:$4 sm:$0xff]   ;;  %v1040_v52 = vld [vmem:[#allocation7 + $0x168] ss:$16 sps:$4 sm:$0xff]   ;;  %v1043_v53 = vld [vmem:[#allocation7 + $0x18c] ss:$16 sps:$4 sm:$0xff]  }
  0x5e   :  { %519 = vmatpush1.bf16.msra.mxu0 %v979_v16  ;;  %v1033_v54 = vld [vmem:[#allocation7 + $0x1a0] ss:$16 sps:$4 sm:$0xff]   ;;  %v1035_v55 = vld [vmem:[#allocation7 + $0x1c4] ss:$16 sps:$4 sm:$0xff]   ;;  %v1046_v56 = vld [vmem:[#allocation7 + $0x188] ss:$16 sps:$4 sm:$0xff]  }
  0x5f   :  { %520 = vmatprep.subr.bf16.mxu0 %v981_v17  ;;  %560 = vmatpush1.bf16.msra.mxu1 %v998_v22  ;;  %v1047_v57 = vld [vmem:[#allocation7 + $0x1ac] ss:$16 sps:$4 sm:$0xff]   ;;  %v1039_v58 = vld [vmem:[#allocation7 + $0x1c0] ss:$16 sps:$4 sm:$0xff]   ;;  %v1041_v59 = vld [vmem:[#allocation7 + $0x1e4] ss:$16 sps:$4 sm:$0xff]  }
  0x60   :  { %561 = vmatprep.subr.bf16.mxu1 %v1001_v23  ;;  %v1049_v60 = vld [vmem:[#allocation7 + $0x1a8] ss:$16 sps:$4 sm:$0xff]   ;;  %v1050_v61 = vld [vmem:[#allocation7 + $0x1cc] ss:$16 sps:$4 sm:$0xff]   ;;  %v1045_v62 = vld [vmem:[#allocation7 + $0x1e0] ss:$16 sps:$4 sm:$0xff]  }
  0x61   :  { %v99_v63 = vld [vmem:[%s1477_s0] sm:$0xff]  ;;  %v1052_v0 = vld [vmem:[#allocation7 + $0x1c8] ss:$16 sps:$4 sm:$0xff]   ;;  %v1053_v1 = vld [vmem:[#allocation7 + $0x1ec] ss:$16 sps:$4 sm:$0xff]   ;;  %vm1283_vm0 = vmmov 0  }
  0x62   :  { %521 = vmatpush1.bf16.msra.mxu0 %v985_v20  ;;  %v102_v2 = vpack.c.bf16 %v99_v63, %v99_v63  ;;  %v1055_v3 = vld [vmem:[#allocation7 + $0x1e8] ss:$16 sps:$4 sm:$0xff]   ;;  %v1056_v4 = vld [vmem:[#allocation8] sm:$0xff]   ;;  %v1058_v7 = vld [vmem:[#allocation8 + $0x10] sm:$0xff]   ;;  %v171_v14 = vshrl.u32 %v170_v13, 7 }
  0x63   :  { %522 = vmatprep.subr.bf16.mxu0 %v987_v21  ;;  %562 = vmatpush1.bf16.msra.mxu1 %v1004_v26  ;;  %v1057_v6 = vld [vmem:[#allocation8 + $0x8] sm:$0xff]   ;;  %v1059_v8 = vld [vmem:[#allocation8 + $0x18] sm:$0xff]   ;;  %v1060_v9 = vld [vmem:[#allocation8 + $0x20] sm:$0xff]  }
  0x64   :  { %563 = vmatprep.subr.bf16.mxu1 %v1007_v27  ;;  %v1061_v10 = vld [vmem:[#allocation8 + $0x28] sm:$0xff]   ;;  %v1062_v11 = vld [vmem:[#allocation8 + $0x30] sm:$0xff]   ;;  %v1063_v12 = vld [vmem:[#allocation8 + $0x38] sm:$0xff]   ;;  %v172_v15 = vsub.s32 0, %v171_v14  ;;  %v176_v17 = vsub.s32 1, %v171_v14  ;;  %v180_v20 = vsub.s32 2, %v171_v14 }
  0x65   :  { %v168_v16 = vld [vmem:[%s1481_s4] sm:$0xf] }
  0x66   :  { %523 = vmatpush1.bf16.msra.mxu0 %v991_v24  ;;  %v173_v18 = vrot.slane %v168_v16, %v172_v15  ;;  %v177_v19 = vrot.slane %v168_v16, %v176_v17 }
  0x67   :  { %524 = vmatprep.subr.bf16.mxu0 %v993_v25  ;;  %564 = vmatpush1.bf16.msra.mxu1 %v1010_v30  ;;  %v184_v30 = vsub.s32 3, %v171_v14 }
  0x68   :  { %565 = vmatprep.subr.bf16.mxu1 %v1013_v31 }
  0x6a   :  { %525 = vmatpush1.bf16.msra.mxu0 %v997_v28  ;;  %v181_v28 = vrot.slane %v168_v16, %v180_v20 }
  0x6b   :  { %526 = vmatprep.subr.bf16.mxu0 %v999_v29  ;;  %566 = vmatpush1.bf16.msra.mxu1 %v1016_v34 }
  0x6c   :  { %567 = vmatprep.subr.bf16.mxu1 %v1019_v35  ;;  %v185_v35 = vrot.slane %v168_v16, %v184_v30 }
  0x6e   :  { %527 = vmatpush1.bf16.msra.mxu0 %v1003_v32 }
  0x6f   :  { %528 = vmatprep.subr.bf16.mxu0 %v1005_v33  ;;  %568 = vmatpush1.bf16.msra.mxu1 %v1022_v38 }
  0x70   :  { %569 = vmatprep.subr.bf16.mxu1 %v1025_v39 }
  0x72   :  { %529 = vmatpush1.bf16.msra.mxu0 %v1009_v36 }
  0x73   :  { %530 = vmatprep.subr.bf16.mxu0 %v1011_v37  ;;  %570 = vmatpush1.bf16.msra.mxu1 %v1028_v44 }
  0x74   :  { %571 = vmatprep.subr.bf16.mxu1 %v1031_v46 }
  0x76   :  { %531 = vmatpush1.bf16.msra.mxu0 %v1015_v41 }
  0x77   :  { %532 = vmatprep.subr.bf16.mxu0 %v1017_v43  ;;  %572 = vmatpush1.bf16.msra.mxu1 %v1034_v48 }
  0x78   :  { %573 = vmatprep.subr.bf16.mxu1 %v1037_v49 }
  0x7a   :  { %533 = vmatpush1.bf16.msra.mxu0 %v1021_v45  ;;  %v97_v45 = vld [vmem:[#allocation5] sm:$0xff] }
  0x7b   :  { %534 = vmatprep.subr.bf16.mxu0 %v1023_v47  ;;  %574 = vmatpush1.bf16.msra.mxu1 %v1040_v52 }
  0x7c   :  { %575 = vmatprep.subr.bf16.mxu1 %v1043_v53 }
  0x7e   :  { %535 = vmatpush1.bf16.msra.mxu0 %v1027_v50 }
  0x7f   :  { %536 = vmatprep.subr.bf16.mxu0 %v1029_v51  ;;  %576 = vmatpush1.bf16.msra.mxu1 %v1046_v56  ;;  %v730_v56 = vld [vmem:[%s1484_s7] sm:$0xff] }
  0x80   :  { %577 = vmatprep.subr.bf16.mxu1 %v1047_v57  ;;  %v908_v57 = vld [vmem:[%s1483_s6] ss:$0 sm:$0xff]  ;;  %vm731_vm1 = vcmp.gt.s32.totalorder %v730_v56, 0  ;;  %s1284_s6 = smov [#allocation10]  }
  0x81   :  { %s789_s7 = sshll.u32 %s1284_s6, 4  ;;  %s790_s7 = int_to_ptr.vmem [resolvable:$true] %s789_s7 }
  0x82   :  { %537 = vmatpush1.bf16.msra.mxu0 %v1033_v54  ;;  %p1179_p5 = scmp.lt.s32.totalorder %s790_s7, %s790_s7 }
  0x83   :  { %538 = vmatprep.subr.bf16.mxu0 %v1035_v55  ;;  %578 = vmatpush1.bf16.msra.mxu1 %v1049_v60 }
  0x84   :  { %579 = vmatprep.subr.bf16.mxu1 %v1050_v61 }
  0x86   :  { %539 = vmatpush1.bf16.msra.mxu0 %v1039_v58 }
  0x87   :  { %540 = vmatprep.subr.bf16.mxu0 %v1041_v59  ;;  %580 = vmatpush1.bf16.msra.mxu1 %v1052_v0  ;;  %v750_v0 = vld [vmem:[%s1485_s8] sm:$0xff]  ;;  %s1174_s8 = scalar_lea.vmem %s790_s7, 128 }
  0x88   :  { %581 = vmatprep.subr.bf16.mxu1 %v1053_v1  ;;  %p1175_p4 = scmp.ne.s32.totalorder %s790_s7, %s1174_s8  ;;  %p1180_p6 = scmp.lt.s32.totalorder %s1174_s8, %s1174_s8 }
  0x8a   :  { %541 = vmatpush1.bf16.msra.mxu0 %v1045_v62  ;;  %p1181_p7 = por %p1180_p6, %p1179_p5 }
  0x8b   :  { %582 = vmatpush1.bf16.msra.mxu1 %v1055_v3  ;;  %926 = vmatprep.subr.bf16.mxu0 %v1282_v5 }
  0x8c   :  { %p1182_p8 = pnand %p1181_p7, %p1175_p4 }
  0x8d   :  { %543 = vmatmul.mubr.bf16.vlgmr.msra.gmra.mrb[0].mxu0 %v102_v2 }
  0x8e   :  { %584 = vmatmul.mubr.bf16.vlgmr.msra.gmra.mrb[0].mxu1 %v102_v2  ;;  %927 = vmatpush3.bf16.msra.mxu0 %v1056_v4 }
  0x8f   :  { %928 = vmatprep.subr.bf16.mxu0 %v1282_v5  ;;  %942 = vmatprep.mubr.msk.bf16.mxu0 %vm1283_vm0, %v1282_v5 }
  0x92   :  { %929 = vmatpush3.bf16.msra.mxu0 %v1057_v6 }
  0x93   :  { %930 = vmatprep.subr.bf16.mxu0 %v1282_v5 }
  0x96   :  { %931 = vmatpush3.bf16.msra.mxu0 %v1058_v7 }
  0x97   :  { %932 = vmatprep.subr.bf16.mxu0 %v1282_v5 }
  0x9a   :  { %933 = vmatpush3.bf16.msra.mxu0 %v1059_v8 }
  0x9b   :  { %934 = vmatprep.subr.bf16.mxu0 %v1282_v5 }
  0x9e   :  { %935 = vmatpush3.bf16.msra.mxu0 %v1060_v9 }
  0x9f   :  { %936 = vmatprep.subr.bf16.mxu0 %v1282_v5 }
  0xa2   :  { %937 = vmatpush3.bf16.msra.mxu0 %v1061_v10 }
  0xa3   :  { %938 = vmatprep.subr.bf16.mxu0 %v1282_v5 }
  0xa6   :  { %939 = vmatpush3.bf16.msra.mxu0 %v1062_v11 }
  0xa7   :  { %940 = vmatprep.subr.bf16.mxu0 %v1282_v5  ;;  %v748_v5 = vand.u32 127, %v170_v13 }
  0xa9   :  { %v1419_v8 = vcvt.s32.f32 %v748_v5 }
  0xaa   :  { %941 = vmatpush3.bf16.msra.mxu0 %v1063_v12 }
  0xab   :  { %vm767_vm4 = vcmp.eq.f32.partialorder %v1419_v8, 16.0 }
 0x160   :  { %v544_v21 = vpop.f32.mrb[0].mxu0 }
 0x161   :  { %v545_v22 = vadd.f32 %v544_v21, %v173_v18  ;;  %v546_v23 = vpop.f32.mrb[1].mxu0  ;;  %v585_v31 = vpop.f32.mrb[0].mxu1 }
 0x162   :  { %v547_v24 = vadd.f32 %v546_v23, %v177_v19  ;;  %v548_v25 = vpop.f32.mrb[2].mxu0  ;;  %v587_v32 = vpop.f32.mrb[1].mxu1  ;;  %v586_v33 = vadd.f32 %v585_v31, %v181_v28 }
 0x163   :  { %v905_v26 = vmul.f32 -1.442695, %v545_v22  ;;  %v549_v27 = vpop.f32.mrb[3].mxu0  ;;  %v589_v34 = vpop.f32.mrb[2].mxu1  ;;  %v588_v38 = vadd.f32 %v587_v32, %v185_v35 }
 0x164   :  { %v906_v29 = vmul.f32 -1.442695, %v547_v24  ;;  %v590_v36 = vpop.f32.mrb[3].mxu1  ;;  %v907_v37 = vmul.f32 -1.442695, %v586_v33 }
 0x165   :  { %1064 = vpow2.f32 %v905_v26 }
 0x166   :  { %1066 = vpow2.f32 %v906_v29 }
 0x167   :  { %1068 = vpow2.f32 %v907_v37 }
 0x168   :  { %1070 = vtanh.f32 %v588_v38 }
 0x16f   :  { %v1065_v39 = vpop.eup %1064 }
 0x170   :  { %v1067_v40 = vpop.eup %1066  ;;  %v601_v41 = vadd.f32 1.0, %v1065_v39 }
 0x171   :  { %v602_v42 = vadd.f32 1.0, %v1067_v40  ;;  %v1069_v43 = vpop.eup %1068 }
 0x172   :  { %1072 = vrcp.f32 %v601_v41  ;;  %v1071_v44 = vpop.eup %1070  ;;  %v603_v47 = vadd.f32 1.0, %v1069_v43 }
 0x173   :  { %1074 = vrcp.f32 %v602_v42 }
 0x174   :  { %1076 = vrcp.f32 %v603_v47 }
 0x17c   :  { %v1073_v46 = vpop.eup %1072 }
 0x17d   :  { %v1075_v48 = vpop.eup %1074  ;;  %v612_v49 = vmul.f32 %v1073_v46, %v1071_v44 }
 0x17e   :  { %v611_v50 = vmul.f32 %v1075_v48, %v97_v45  ;;  %v1077_v52 = vpop.eup %1076 }
 0x180   :  { %v613_v51 = vadd.f32 %v612_v49, %v611_v50 }
 0x182   :  { %1078 = vtanh.f32 %v613_v51  ;;  %617 = vst [vmem:[#allocation14] sm:$0xff] %v613_v51 }
 0x18c   :  { %v1079_v53 = vpop.eup %1078 }
 0x18d   :  { %v615_v54 = vmul.f32 %v1079_v53, %v1077_v52 }
 0x18f   :  { %v618_v55 = vpack.c.bf16 %v615_v54, %v615_v54  ;;  %616 = vst [vmem:[#allocation13] sm:$0xff] %v615_v54 }
 0x191   :  { %943 = vmatmul.mubr.bf16.vlgmr.msra.gmra.mrb[4].mxu0 %v618_v55 }
 0x264   :  { %v724_v58 = vpop.f32.mrb[4].mxu0 }
 0x265   :  { %v725_v59 = vadd.f32 %v908_v57, %v724_v58  ;;  %v944_v60 = vpop.f32.mrb[5].mxu0 }
 0x266   :  { %v727_v61 = vpop.f32.mrb[6].mxu0 }
 0x267   :  { %v732_v62 = vsel %vm731_vm1, %v725_v59, -1e+30  ;;  %v945_v63 = vpop.f32.mrb[7].mxu0  ;;  %v768_v18 = vsel %vm767_vm4, %v725_v59, 0.0 }
 0x268   :  { %733 = vmax.xlane.f32.xlu0 %v732_v62  ;;  %v751_v1 = vadd.f32 %v750_v0, %v732_v62 }
 0x26c   :  { %752 = vmax.xlane.f32.xlu0 %v751_v1 }
 0x2f5   :  { %v734_v2 = vpop.xlane.xlu0 %733 }
 0x2f6   :  { %v735_v3 = vsub.f32 %v732_v62, %v734_v2 }
 0x2f8   :  { %v736_v4 = vmul.f32 1.442695, %v735_v3 }
 0x2f9   :  { %v753_v6 = vpop.xlane.xlu0 %752 }
 0x2fa   :  { %1080 = vpow2.f32 %v736_v4  ;;  %vm754_vm2 = vcmp.eq.f32.partialorder %v751_v1, %v753_v6 }
 0x2fb   :  { %v755_v9 = vsel %vm754_vm2, %v1419_v8, 128.0 }
 0x304   :  { %v1081_v7 = vpop.eup %1080 }
 0x305   :  { %738 = vadd.xlane.f32.xlu1 %v1081_v7 }
 0x309   :  { %756 = vmin.xlane.f32.xlu1 %v755_v9 }
 0x392   :  { %v739_v10 = vpop.xlane.xlu1 %738 }
 0x393   :  { %1082 = vlog2.f32 %v739_v10 }
 0x396   :  { %v757_v15 = vpop.xlane.xlu1 %756 }
 0x397   :  { %vm758_vm3 = vcmp.eq.f32.partialorder %v1419_v8, %v757_v15 }
 0x39d   :  { %v1083_v11 = vpop.eup %1082 }
 0x39e   :  { %v741_v12 = vmul.f32 0.6931472, %v1083_v11 }
 0x3a0   :  { %v742_v14 = vadd.f32 %v741_v12, %v734_v2 }
 0x3a2   :  { %v743_v16 = vsub.f32 %v732_v62, %v742_v14 }
 0x3a4   :  { %v744_v17 = vmul.f32 1.442695, %v743_v16  ;;  %v759_v13 = vsel %vm758_vm3, %v743_v16, 0.0 }
 0x3a5   :  { %760 = vadd.xlane.f32.xlu0 %v759_v13 }
 0x3a6   :  { %1084 = vpow2.f32 %v744_v17 }
 0x3a9   :  { %769 = vadd.xlane.f32.xlu0 %v768_v18 }
 0x3b0   :  { %v1085_v19 = vpop.eup %1084 }
 0x3b1   :  { %746 = vst [vmem:[#allocation10] sm:$0xff] %v1085_v19  ;;  %v762_v20 = vmul.f32 %v1085_v19, %v743_v16 }
 0x3b3   :  { %v763_v21 = vsel %vm731_vm1, %v762_v20, 0.0 }
 0x3b4   :  { %764 = vadd.xlane.f32.xlu1 %v763_v21 }
 0x3b5   :  { %1185 = shalt.err (!%p1182_p8)
}
 0x3b6   :  { %s1186_s25 = scalar_lea.hbm %s1486_s9, 128 }
 0x3b7   :  { %p1187_p9 = scmp.ne.s32.totalorder %s1486_s9, %s1186_s25  ;;  %p1190_p10 = scmp.lt.u32.totalorder %s1186_s25, %s1486_s9 }
 0x3b9   :  { %p1192_p11 = pnand %p1190_p10, %p1187_p9 }
 0x3bb   :  { %1195 = shalt.err (!%p1192_p11)
}
 0x3bc   :  { %792 = dma.vmem_to_hbm [thread:$0]  %s790_s7, 128, %s1486_s9, [#allocation4]  }
 0x3bd   :  { %s1285_s13 = smov [#allocation14]  }
 0x3be   :  { %s819_s3 = sshll.u32 %s1285_s13, 4  ;;  %s820_s3 = int_to_ptr.vmem [resolvable:$true] %s819_s3 }
 0x3bf   :  { %s1196_s28 = scalar_lea.vmem %s820_s3, 128  ;;  %p1201_p13 = scmp.lt.s32.totalorder %s820_s3, %s820_s3 }
 0x3c0   :  { %p1197_p12 = scmp.ne.s32.totalorder %s820_s3, %s1196_s28  ;;  %p1202_p0 = scmp.lt.s32.totalorder %s1196_s28, %s1196_s28 }
 0x3c2   :  { %p1203_p1 = por %p1202_p0, %p1201_p13 }
 0x3c4   :  { %p1204_p2 = pnand %p1203_p1, %p1197_p12 }
 0x3c6   :  { %1207 = shalt.err (!%p1204_p2)
}
 0x3c7   :  { %s1208_s5 = scalar_lea.hbm %s1489_s12, 128 }
 0x3c8   :  { %p1209_p3 = scmp.ne.s32.totalorder %s1489_s12, %s1208_s5  ;;  %p1212_p4 = scmp.lt.u32.totalorder %s1208_s5, %s1489_s12 }
 0x3ca   :  { %p1214_p5 = pnand %p1212_p4, %p1209_p3 }
 0x3cc   :  { %1217 = shalt.err (!%p1214_p5)
}
 0x3cd   :  { %822 = dma.vmem_to_hbm [thread:$0]  %s820_s3, 128, %s1489_s12, [#allocation15]   ;;  %vm773_vm5 = vcmp.eq.f32.partialorder %v1419_v8, 1.0  ;;  %vm771_vm6 = vcmp.eq.f32.partialorder %v1419_v8, 0.0  ;;  %vm776_vm7 = vcmp.eq.f32.partialorder %v1419_v8, 2.0  ;;  %vm779_vm8 = vcmp.eq.f32.partialorder %v1419_v8, 3.0 }
 0x3ce   :  { %v772_v25 = vsel %vm771_vm6, %v757_v15, 0.0  ;;  %s1286_s1 = smov [#allocation11]   ;;  %s1287_s12 = smov [#allocation13]  }
 0x3cf   :  { %s799_s24 = sshll.u32 %s1286_s1, 4  ;;  %s809_s19 = sshll.u32 %s1287_s12, 4  ;;  %s800_s24 = int_to_ptr.vmem [resolvable:$true] %s799_s24  ;;  %s810_s19 = int_to_ptr.vmem [resolvable:$true] %s809_s19 }
 0x3d0   :  { %s1218_s20 = scalar_lea.vmem %s800_s24, 128  ;;  %p1223_p7 = scmp.lt.s32.totalorder %s800_s24, %s800_s24 }
 0x3d1   :  { %p1219_p6 = scmp.ne.s32.totalorder %s800_s24, %s1218_s20  ;;  %p1224_p8 = scmp.lt.s32.totalorder %s1218_s20, %s1218_s20 }
 0x3d3   :  { %p1225_p9 = por %p1224_p8, %p1223_p7 }
 0x3d5   :  { %p1226_p10 = pnand %p1225_p9, %p1219_p6 }
 0x432   :  { %v761_v22 = vpop.xlane.xlu0 %760 }
 0x433   :  { %v774_v23 = vsel %vm773_vm5, %v761_v22, 0.0 }
 0x434   :  { %v775_v27 = vadd.f32 %v774_v23, %v772_v25 }
 0x436   :  { %v770_v28 = vpop.xlane.xlu0 %769 }
 0x437   :  { %v780_v31 = vsel %vm779_vm8, %v770_v28, 0.0 }
 0x441   :  { %v765_v24 = vpop.xlane.xlu1 %764 }
 0x442   :  { %v766_v26 = vsub.f32 0.0, %v765_v24 }
 0x444   :  { %v777_v29 = vsel %vm776_vm7, %v766_v26, 0.0 }
 0x445   :  { %v778_v30 = vadd.f32 %v777_v29, %v775_v27 }
 0x447   :  { %v781_v32 = vadd.f32 %v780_v31, %v778_v30 }
 0x449   :  { %782 = vst [vmem:[#allocation11] sm:$0xff] %v781_v32 }
 0x44a   :  { %1229 = shalt.err (!%p1226_p10)
}
 0x44b   :  { %s1230_s8 = scalar_lea.hbm %s1487_s10, 128 }
 0x44c   :  { %p1231_p11 = scmp.ne.s32.totalorder %s1487_s10, %s1230_s8  ;;  %p1234_p12 = scmp.lt.u32.totalorder %s1230_s8, %s1487_s10 }
 0x44e   :  { %p1236_p13 = pnand %p1234_p12, %p1231_p11 }
 0x450   :  { %1239 = shalt.err (!%p1236_p13)
}
 0x451   :  { %802 = dma.vmem_to_hbm [thread:$0]  %s800_s24, 128, %s1487_s10, [#allocation12]  }
 0x452   :  { %s1240_s27 = scalar_lea.vmem %s810_s19, 128  ;;  %p1245_p1 = scmp.lt.s32.totalorder %s810_s19, %s810_s19 }
 0x453   :  { %p1241_p0 = scmp.ne.s32.totalorder %s810_s19, %s1240_s27  ;;  %p1246_p2 = scmp.lt.s32.totalorder %s1240_s27, %s1240_s27 }
 0x455   :  { %p1247_p3 = por %p1246_p2, %p1245_p1 }
 0x457   :  { %p1248_p4 = pnand %p1247_p3, %p1241_p0 }
 0x459   :  { %1251 = shalt.err (!%p1248_p4)
}
 0x45a   :  { %s1252_s13 = scalar_lea.hbm %s1488_s11, 128 }
 0x45b   :  { %p1253_p5 = scmp.ne.s32.totalorder %s1488_s11, %s1252_s13  ;;  %p1256_p6 = scmp.lt.u32.totalorder %s1252_s13, %s1488_s11 }
 0x45d   :  { %p1258_p7 = pnand %p1256_p6, %p1253_p5 }
 0x45f   :  { %1261 = shalt.err (!%p1258_p7)
}
 0x460   :  { %812 = dma.vmem_to_hbm [thread:$0]  %s810_s19, 128, %s1488_s11, [#allocation12]  }
 0x461   :  { %1268 = dma.done.wait [#allocation4], 128  }
 0x462   :  { %1269 = vsyncadd [#allocation4], 4294967168 }
 0x463   :  { %1270 = dma.done.wait [#allocation12], 256  }
 0x464   :  { %1271 = vsyncadd [#allocation12], 4294967040 }
 0x465   :  { %1272 = dma.done.wait [#allocation15], 128  }
 0x466   :  { %1273 = vsyncadd [#allocation15], 4294967168 }
 0x467   :  { %835 = vsyncpa [#allocation3], 1 }
 0x468   :  { %836 = vsyncpa [#allocation6], 1 }
 0x469   :  { %837 = vsyncpa [#allocation9], 1 }
 0x46a   :  { %838 = vsyncpa [#allocation4], 1 }
 0x46b   :  { %839 = vsyncpa [#allocation12], 1 }
 0x46c   :  { %840 = vsyncpa [#allocation15], 1 }

</bundles_post_ra>
